<compile_context>
chip_gen: v6e
topology: v6e:2x2x1
jax: 0.10.0
libtpu: 0.0.40
codegen_flags: <defaults>
</compile_context>

<pallas_src>
import jax
import jax.numpy as jnp
from jax.experimental import pallas as pl
from jax.experimental.pallas import tpu as pltpu


def _cast_kernel(x_ref, o_ref):
    # Elementwise widen-to-f32. DMA/HBM bandwidth is the binding resource;
    # the cast itself is free filler in the VALU slots.
    o_ref[...] = x_ref[...].astype(jnp.float32)


def _pallas_cast_2d(x2d):
    """Cast a 2-D array to float32 with a row-tiled, pipelined Pallas kernel."""
    rows, lanes = x2d.shape

    if rows <= 1024:
        tb = rows            # single block; block == full dim (always legal)
    else:
        tb = 1024            # multiple of 8 sublanes -> clean (8,128) tiling

    grid = (pl.cdiv(rows, tb),)

    return pl.pallas_call(
        _cast_kernel,
        out_shape=jax.ShapeDtypeStruct((rows, lanes), jnp.float32),
        grid=grid,
        in_specs=[pl.BlockSpec((tb, lanes), lambda i: (i, 0))],
        out_specs=pl.BlockSpec((tb, lanes), lambda i: (i, 0)),
        compiler_params=pltpu.CompilerParams(
            dimension_semantics=("parallel",)),
    )(x2d)


def policy_forward(state, action=None):
    """Mirror of Policy.forward(state, action=None): cast `state` to float32.

    `action` is unused by the visible reference code.
    """
    # TODO(synk): Policy.__init__ declares no parameters and forward()'s body
    # is truncated after the FloatTensor cast (no layers / Normal dist appear
    # in the provided code) — only the cast is implemented.
    state = jnp.asarray(state)

    # Fast path: already float32 -> pure copy XLA would elide; skip the kernel.
    if state.dtype == jnp.float32:
        return state

    orig_shape = state.shape
    total = int(state.size)
    if total == 0:
        return state.astype(jnp.float32)

    # Present a lane-dense (multiple-of-128) last dim when possible so both
    # the vector loads and the stores are full-width (no masked partial vst).
    if total % 128 == 0:
        x2d = state.reshape(total // 128, 128)
    else:
        lanes = orig_shape[-1] if state.ndim >= 1 else 1
        x2d = state.reshape(total // lanes, lanes)

    out2d = _pallas_cast_2d(x2d)
    return out2d.reshape(orig_shape)


if __name__ == "__main__":
    key = jax.random.PRNGKey(0)
    batch, state_size = 2, 32  # small shapes consistent with Policy(state_size, action_size)

    # 1) Non-f32 input exercises the Pallas cast path (bf16 read from HBM,
    #    widened to f32 inside the kernel). 2*32 elements -> full-last-dim path.
    state_bf16 = jax.random.normal(
        key, (batch, state_size), dtype=jnp.float32).astype(jnp.bfloat16)
    out = jax.block_until_ready(policy_forward(state_bf16))
    assert out.shape == (batch, state_size)
    assert out.dtype == jnp.float32
    assert bool(jnp.all(out == state_bf16.astype(jnp.float32)))

    # 2) Element count divisible by 128 -> lane-dense (rows, 128) kernel path.
    state_i8 = jax.random.randint(
        jax.random.PRNGKey(1), (4, 64), -128, 127, dtype=jnp.int32
    ).astype(jnp.int8)
    out2 = jax.block_until_ready(policy_forward(state_i8))
    assert out2.shape == (4, 64)
    assert out2.dtype == jnp.float32
    assert bool(jnp.all(out2 == state_i8.astype(jnp.float32)))

    # 3) Already-float32 input takes the short-circuit (no kernel launch).
    state_f32 = jax.random.normal(key, (batch, state_size), dtype=jnp.float32)
    out3 = jax.block_until_ready(policy_forward(state_f32))
    assert out3.shape == (batch, state_size)
    assert out3.dtype == jnp.float32
    assert bool(jnp.all(out3 == state_f32))

    print("KERNEL_OK")
</pallas_src>

<mosaic_0001>
module attributes {stable_mosaic.version = 11 : i64} {
  func.func @_cast_kernel(%arg0: i32, %arg1: memref<2x32xbf16, #tpu.memory_space<vmem>>, %arg2: memref<2x32xf32, #tpu.memory_space<vmem>>) attributes {dimension_semantics = [#tpu.dimension_semantics<parallel>], iteration_bounds = array<i64: 1>, scalar_prefetch = 0 : i64, scratch_operands = 0 : i64, tpu.core_type = #tpu.core_type<tc>, window_params = [{transform_indices = @transform_0, window_bounds = array<i64: 2, 32>}, {transform_indices = @transform_1, window_bounds = array<i64: 2, 32>}]} {
    %c0 = arith.constant 0 : index
    %c0_0 = arith.constant 0 : index
    %0 = vector.load %arg1[%c0, %c0_0] : memref<2x32xbf16, #tpu.memory_space<vmem>>, vector<2x32xbf16>
    %1 = arith.extf %0 : vector<2x32xbf16> to vector<2x32xf32>
    %c0_1 = arith.constant 0 : index
    %c0_2 = arith.constant 0 : index
    %2 = vector.load %arg2[%c0_1, %c0_2] : memref<2x32xf32, #tpu.memory_space<vmem>>, vector<2x32xf32>
    tpu.vector_store %arg2[%c0_1, %c0_2], %1 {strides = array<i32>} : memref<2x32xf32, #tpu.memory_space<vmem>>, vector<2x32xf32>,
    return
  }
  func.func @transform_0(%arg0: i32) -> (i32, i32) {
    %c0_i32 = arith.constant 0 : i32
    %c0_i32_0 = arith.constant 0 : i32
    return %arg0, %c0_i32 : i32, i32
  }
  func.func @transform_1(%arg0: i32) -> (i32, i32) {
    %c0_i32 = arith.constant 0 : i32
    %c0_i32_0 = arith.constant 0 : i32
    return %arg0, %c0_i32 : i32, i32
  }
}

</mosaic_0001>

<bundles_post_ra>
// kernel: tpu_custom_call.1
= control target key start
LH: loop header
LB: loop body
LE: loop exit
PB: predicated region body
PF: predicated region fallthrough
CT: control target
= control target key end

     0   :  { %6 = vsyncpa [#allocation3], 0  ;;  %s104_s0 = inlined_call_operand.hbm [shape: bf16[2,32], index: 0, kind: input, shape index: {}]   ;;  %s105_s1 = inlined_call_operand.hbm [shape: f32[2,32], index: 1, kind: output, shape index: {}]  }
   0x1   :  { %7 = vsyncpa [#allocation4], 0  ;;  %s86_s6 = smov [#allocation2]  }
   0x2   :  { %s14_s7 = sshll.u32 %s86_s6, 4  ;;  %s15_s7 = int_to_ptr.vmem [resolvable:$true] %s14_s7 }
   0x3   :  { %s50_s8 = scalar_lea.vmem %s15_s7, 16  ;;  %s54_s9 = scalar_lea.vmem %s15_s7, 32 }
   0x4   :  { %p51_p0 = scmp.ne.s32.totalorder %s15_s7, %s50_s8  ;;  %p55_p1 = scmp.lt.s32.totalorder %s15_s7, %s15_s7 }
   0x5   :  { %p56_p2 = scmp.lt.s32.totalorder %s54_s9, %s50_s8 }
   0x7   :  { %p57_p3 = por %p56_p2, %p55_p1 }
   0x9   :  { %p58_p4 = pnand %p57_p3, %p51_p0 }
   0xb   :  { %61 = shalt.err (!%p58_p4)
}
   0xc   :  { %17 = dma.hbm_to_vmem [thread:$0]  %s104_s0, 16, %s15_s7, [#allocation3]  }
   0xd   :  { %82 = dma.done.wait [#allocation3], 16  }
   0xe   :  { %83 = vsyncadd [#allocation3], 4294967280  ;;  %s87_s12 = smov [#allocation5]   ;;  %v21_v0 = vld [vmem:[#allocation2] sm:$0x1]  ;;  %vm23_vm0 = vcmask 254976  }
   0xf   :  { %s31_s13 = sshll.u32 %s87_s12, 4  ;;  %v22_v1 = vunpack.c.l.bf16 %v21_v0  ;;  %s32_s13 = int_to_ptr.vmem [resolvable:$true] %s31_s13 }
  0x10   :  { %s62_s14 = scalar_lea.vmem %s32_s13, 32  ;;  %p67_p6 = scmp.lt.s32.totalorder %s32_s13, %s32_s13 }
  0x11   :  { %24 = vst.msk [vmem:[#allocation5] sm:$0x3] %vm23_vm0, %v22_v1  ;;  %p63_p5 = scmp.ne.s32.totalorder %s32_s13, %s62_s14  ;;  %p68_p7 = scmp.lt.s32.totalorder %s62_s14, %s62_s14 }
  0x13   :  { %p69_p8 = por %p68_p7, %p67_p6 }
  0x15   :  { %p70_p9 = pnand %p69_p8, %p63_p5 }
  0x17   :  { %73 = shalt.err (!%p70_p9)
}
  0x18   :  { %34 = dma.vmem_to_hbm [thread:$0]  %s32_s13, 32, %s105_s1, [#allocation4]  }
  0x19   :  { %84 = dma.done.wait [#allocation4], 32  }
  0x1a   :  { %85 = vsyncadd [#allocation4], 4294967264 }
  0x1b   :  { %38 = vsyncpa [#allocation3], 1 }
  0x1c   :  { %39 = vsyncpa [#allocation4], 1 }

</bundles_post_ra>
